<compile_context>
chip_gen: v7x
topology: tpu7x:2x2x1
jax: 0.10.0
libtpu: 0.0.40
codegen_flags: <defaults>
</compile_context>

<pallas_src>
import functools

import jax
import jax.numpy as jnp
from jax.experimental import pallas as pl
from jax.experimental.pallas import tpu as pltpu


def _mlp_kernel(x_ref, w1_ref, shift_ref, w2_ref, b2_ref, o_ref):
    tb = x_ref.shape[0]

    # Layer 1: (TB, Din) @ (Din, H) on the MXU, f32 accumulate.
    # Bias + BatchNorm(eval) are pre-folded into w1/shift -> one dot + one add.
    h = jnp.dot(x_ref[...], w1_ref[...], preferred_element_type=jnp.float32)
    h = h + shift_ref[...]                              # folded b1 + BN shift
    h = jnp.where(h >= 0, h, jnp.float32(0.1) * h)      # LeakyReLU(0.1)

    # Layer 2 (output_dim == 1): VPU multiply + lane reduction instead of a
    # second, N=1 MXU matmul (removes the MXU round trip from the critical path).
    s = jnp.sum(h * w2_ref[...], axis=-1, keepdims=True)   # (TB, 1)

    # Relayout the per-row scalars from sublanes to lanes so the output block is
    # lane-dense: broadcast across a native (TB,128) tile, transpose on the XLU,
    # keep row 0.  Final store is an unmasked, 128-lane-dense vst.
    s_rep = jnp.broadcast_to(s, (tb, 128))
    s_t = jnp.transpose(s_rep)                               # (128, TB)
    o_ref[...] = (s_t[0:1, :] + b2_ref[...]).astype(o_ref.dtype)


def _round_up(n, m):
    return (n + m - 1) // m * m


@functools.partial(jax.jit, static_argnames=("batch_tile", "compute_dtype"))
def net_forward(x, w1_fold, shift, w2_row, b2, *, batch_tile=1024,
                compute_dtype=jnp.bfloat16):
    """Fused MLP forward. x: (B, D_in) float32 -> (B, 1) float32."""
    B, D_in = x.shape
    H = w1_fold.shape[1]

    # Batch tile: multiple of 128 (lane-dense output blocks, canonical XLU
    # transpose) and capped so double-buffered x tiles + the (TB, H) f32
    # intermediate stay far below v7x's 32 MiB scoped VMEM (TB=1024 -> ~1.3 MiB).
    tb = max(128, min(_round_up(batch_tile, 128), _round_up(B, 128)))
    Bp = _round_up(B, tb)
    if Bp != B:
        x = jnp.pad(x, ((0, Bp - B), (0, 0)))

    # bf16 at the MXU boundary (f32 accumulate); elementwise math stays f32.
    # Pass compute_dtype=jnp.float32 for bit-faithful f32 semantics.
    x_c = x.astype(compute_dtype)
    w1_c = w1_fold.astype(compute_dtype)

    out_row = pl.pallas_call(
        _mlp_kernel,
        out_shape=jax.ShapeDtypeStruct((1, Bp), jnp.float32),
        grid=(Bp // tb,),
        in_specs=[
            pl.BlockSpec((tb, D_in), lambda i: (i, 0)),    # x tile (streams)
            pl.BlockSpec((D_in, H), lambda i: (0, 0)),     # W1' (resident)
            pl.BlockSpec((1, H), lambda i: (0, 0)),        # folded bias+BN shift
            pl.BlockSpec((1, H), lambda i: (0, 0)),        # W2 as a row
            pl.BlockSpec((1, 1), lambda i: (0, 0)),        # b2
        ],
        out_specs=pl.BlockSpec((1, tb), lambda i: (0, i)),  # lane-dense output
        compiler_params=pltpu.CompilerParams(
            dimension_semantics=("parallel",)),
    )(x_c, w1_c, shift, w2_row, b2)

    # (1, Bp) -> (Bp, 1) is a free reshape of a contiguous buffer; drop padding.
    return out_row.reshape(Bp, 1)[:B]


def init_params(key, input_dim, hidden, output_dim=1):
    """Init mirroring Net._weight_init / PyTorch defaults, with eval-mode
    BatchNorm and the first-layer bias folded into (w1_fold, shift)."""
    k1, k2, k3, k4 = jax.random.split(key, 4)

    # kaiming_normal_(a=0.1, mode='fan_in', nonlinearity='leaky_relu')
    gain = (2.0 / (1.0 + 0.1 ** 2)) ** 0.5

    std1 = gain / (input_dim ** 0.5)
    w1 = std1 * jax.random.normal(k1, (hidden, input_dim), jnp.float32)   # (out, in)
    bound1 = 1.0 / (input_dim ** 0.5)                  # PyTorch Linear bias default
    b1 = jax.random.uniform(k2, (hidden,), jnp.float32, -bound1, bound1)

    std2 = gain / (hidden ** 0.5)
    w2 = std2 * jax.random.normal(k3, (output_dim, hidden), jnp.float32)  # (1, hidden)
    bound2 = 1.0 / (hidden ** 0.5)
    b2 = jax.random.uniform(k4, (output_dim,), jnp.float32, -bound2, bound2)

    # BatchNorm1d(hidden) eval-mode affine (init: mean=0, var=1, gamma=1, beta=0).
    gamma = jnp.ones((hidden,), jnp.float32)
    beta = jnp.zeros((hidden,), jnp.float32)
    running_mean = jnp.zeros((hidden,), jnp.float32)
    running_var = jnp.ones((hidden,), jnp.float32)
    eps = 1e-5
    bn_scale = gamma / jnp.sqrt(running_var + eps)
    bn_shift = beta - running_mean * bn_scale

    # Fold: BN(x@W1^T + b1) == x @ (W1^T * scale) + (b1*scale + shift)
    w1_fold = w1.T * bn_scale[None, :]                       # (in, hidden)
    shift = (b1 * bn_scale + bn_shift).reshape(1, hidden)

    return dict(
        w1_fold=w1_fold,
        shift=shift,
        w2_row=w2.reshape(1, hidden),     # second Linear weight as a row
        b2=b2.reshape(1, output_dim),     # (1, 1)
    )


if __name__ == "__main__":
    INPUT_DIM, HIDDEN, OUTPUT_DIM = 32, 256, 1
    BATCH = 256

    key = jax.random.PRNGKey(0)
    kx, kp = jax.random.split(key)
    x = jax.random.normal(kx, (BATCH, INPUT_DIM), jnp.float32)
    p = init_params(kp, INPUT_DIM, HIDDEN, OUTPUT_DIM)

    # --- Default bf16-MXU path; batch_tile=128 -> 2 grid steps (exercises tiling
    # with resident weights and the parallel batch axis).
    out_bf16 = net_forward(x, p["w1_fold"], p["shift"], p["w2_row"], p["b2"],
                           batch_tile=128)
    out_bf16 = jax.block_until_ready(out_bf16)

    # Matched reference: same bf16 cast at the matmul boundary, f32 elsewhere.
    hb = jnp.dot(x.astype(jnp.bfloat16), p["w1_fold"].astype(jnp.bfloat16),
                 preferred_element_type=jnp.float32) + p["shift"]
    hb = jnp.where(hb >= 0, hb, 0.1 * hb)
    ref_bf16 = jnp.sum(hb * p["w2_row"], axis=-1, keepdims=True) + p["b2"]
    assert out_bf16.shape == (BATCH, OUTPUT_DIM)
    assert jnp.allclose(out_bf16, ref_bf16, atol=2e-3, rtol=2e-3)

    # --- f32 path (faithful eval-mode numerics), single-tile grid.
    out_f32 = net_forward(x, p["w1_fold"], p["shift"], p["w2_row"], p["b2"],
                          compute_dtype=jnp.float32)
    out_f32 = jax.block_until_ready(out_f32)
    hf = x @ p["w1_fold"] + p["shift"]
    hf = jnp.where(hf >= 0, hf, 0.1 * hf)
    ref_f32 = jnp.sum(hf * p["w2_row"], axis=-1, keepdims=True) + p["b2"]
    assert jnp.allclose(out_f32, ref_f32, atol=1e-4, rtol=1e-4)

    print("KERNEL_OK")
</pallas_src>

<mosaic_0001>
module attributes {stable_mosaic.version = 11 : i64} {
  func.func @_mlp_kernel(%arg0: i32, %arg1: memref<128x32xbf16, #tpu.memory_space<vmem>>, %arg2: memref<32x256xbf16, #tpu.memory_space<vmem>>, %arg3: memref<1x256xf32, #tpu.memory_space<vmem>>, %arg4: memref<1x256xf32, #tpu.memory_space<vmem>>, %arg5: memref<1x1xf32, #tpu.memory_space<vmem>>, %arg6: memref<1x128xf32, #tpu.memory_space<vmem>>) attributes {dimension_semantics = [#tpu.dimension_semantics<parallel>], iteration_bounds = array<i64: 2>, scalar_prefetch = 0 : i64, scratch_operands = 0 : i64, tpu.core_type = #tpu.core_type<tc>, window_params = [{transform_indices = @transform_0, window_bounds = array<i64: 128, 32>}, {pipeline_mode = #tpu.pipeline_mode<synchronous>, transform_indices = @transform_1, window_bounds = array<i64: 32, 256>}, {pipeline_mode = #tpu.pipeline_mode<synchronous>, transform_indices = @transform_2, window_bounds = array<i64: 1, 256>}, {pipeline_mode = #tpu.pipeline_mode<synchronous>, transform_indices = @transform_3, window_bounds = array<i64: 1, 256>}, {pipeline_mode = #tpu.pipeline_mode<synchronous>, transform_indices = @transform_4, window_bounds = array<i64: 1, 1>}, {transform_indices = @transform_5, window_bounds = array<i64: 1, 128>}]} {
    %c0 = arith.constant 0 : index
    %c0_0 = arith.constant 0 : index
    %0 = vector.load %arg1[%c0, %c0_0] : memref<128x32xbf16, #tpu.memory_space<vmem>>, vector<128x32xbf16>
    %c0_1 = arith.constant 0 : index
    %c0_2 = arith.constant 0 : index
    %1 = vector.load %arg2[%c0_1, %c0_2] : memref<32x256xbf16, #tpu.memory_space<vmem>>, vector<32x256xbf16>
    %cst = arith.constant dense<0.000000e+00> : vector<128x256xf32>
    %2 = tpu.matmul %0, %1, %cst {dimension_numbers = #tpu.dot_dimension_numbers<[1], [0], [0], [1], [0, 0, 1, 1], [], []>} : vector<128x32xbf16>, vector<32x256xbf16>, vector<128x256xf32> -> vector<128x256xf32>
    %c0_3 = arith.constant 0 : index
    %c0_4 = arith.constant 0 : index
    %3 = vector.load %arg3[%c0_3, %c0_4] : memref<1x256xf32, #tpu.memory_space<vmem>>, vector<1x256xf32>
    %4 = vector.broadcast %3 : vector<1x256xf32> to vector<128x256xf32>
    %5 = arith.addf %2, %4 : vector<128x256xf32>
    %cst_5 = arith.constant 0.000000e+00 : f32
    %6 = vector.broadcast %cst_5 : f32 to vector<128x256xf32>
    %7 = arith.cmpf oge, %5, %6 : vector<128x256xf32>
    %cst_6 = arith.constant 1.000000e-01 : f32
    %8 = vector.broadcast %cst_6 : f32 to vector<128x256xf32>
    %9 = arith.mulf %8, %5 : vector<128x256xf32>
    %10 = arith.select %7, %5, %9 : vector<128x256xi1>, vector<128x256xf32>
    %c0_7 = arith.constant 0 : index
    %c0_8 = arith.constant 0 : index
    %11 = vector.load %arg4[%c0_7, %c0_8] : memref<1x256xf32, #tpu.memory_space<vmem>>, vector<1x256xf32>
    %12 = vector.broadcast %11 : vector<1x256xf32> to vector<128x256xf32>
    %13 = arith.mulf %10, %12 : vector<128x256xf32>
    %cst_9 = arith.constant dense<0.000000e+00> : vector<128xf32>
    %14 = vector.multi_reduction <add>, %13, %cst_9 [1] : vector<128x256xf32> to vector<128xf32>
    %15 = vector.shape_cast %14 : vector<128xf32> to vector<128x1xf32>
    %16 = vector.shape_cast %15 : vector<128x1xf32> to vector<128x1xf32>
    %17 = vector.broadcast %16 : vector<128x1xf32> to vector<128x128xf32>
    %18 = tpu.transpose %17, [1, 0] : vector<128x128xf32> -> vector<128x128xf32>
    %19 = vector.extract_strided_slice %18 {offsets = [0, 0], sizes = [1, 128], strides = [1, 1]} : vector<128x128xf32> to vector<1x128xf32>
    %c0_10 = arith.constant 0 : index
    %c0_11 = arith.constant 0 : index
    %20 = vector.load %arg5[%c0_10, %c0_11] : memref<1x1xf32, #tpu.memory_space<vmem>>, vector<1x1xf32>
    %21 = vector.broadcast %20 : vector<1x1xf32> to vector<1x128xf32>
    %22 = arith.addf %19, %21 : vector<1x128xf32>
    %c0_12 = arith.constant 0 : index
    %c0_13 = arith.constant 0 : index
    %23 = vector.load %arg6[%c0_12, %c0_13] : memref<1x128xf32, #tpu.memory_space<vmem>>, vector<1x128xf32>
    tpu.vector_store %arg6[%c0_12, %c0_13], %22 {strides = array<i32>} : memref<1x128xf32, #tpu.memory_space<vmem>>, vector<1x128xf32>,
    return
  }
  func.func @transform_0(%arg0: i32) -> (i32, i32) {
    %c0_i32 = arith.constant 0 : i32
    %c0_i32_0 = arith.constant 0 : i32
    return %arg0, %c0_i32 : i32, i32
  }
  func.func @transform_1(%arg0: i32) -> (i32, i32) {
    %c0_i32 = arith.constant 0 : i32
    %c0_i32_0 = arith.constant 0 : i32
    %c0_i32_1 = arith.constant 0 : i32
    return %c0_i32, %c0_i32_0 : i32, i32
  }
  func.func @transform_2(%arg0: i32) -> (i32, i32) {
    %c0_i32 = arith.constant 0 : i32
    %c0_i32_0 = arith.constant 0 : i32
    %c0_i32_1 = arith.constant 0 : i32
    return %c0_i32, %c0_i32_0 : i32, i32
  }
  func.func @transform_3(%arg0: i32) -> (i32, i32) {
    %c0_i32 = arith.constant 0 : i32
    %c0_i32_0 = arith.constant 0 : i32
    %c0_i32_1 = arith.constant 0 : i32
    return %c0_i32, %c0_i32_0 : i32, i32
  }
  func.func @transform_4(%arg0: i32) -> (i32, i32) {
    %c0_i32 = arith.constant 0 : i32
    %c0_i32_0 = arith.constant 0 : i32
    %c0_i32_1 = arith.constant 0 : i32
    return %c0_i32, %c0_i32_0 : i32, i32
  }
  func.func @transform_5(%arg0: i32) -> (i32, i32) {
    %c0_i32 = arith.constant 0 : i32
    %c0_i32_0 = arith.constant 0 : i32
    return %c0_i32, %arg0 : i32, i32
  }
}

</mosaic_0001>

<bundles_post_ra>
// kernel: net_forward.1
= control target key start
LH: loop header
LB: loop body
LE: loop exit
PB: predicated region body
PF: predicated region fallthrough
CT: control target
= control target key end

     0   :  { %s1228_s0 = inlined_call_operand.vmem [shape: bf16[256,32], index: 0, kind: input, shape index: {}]   ;;  %s1229_s1 = inlined_call_operand.vmem [shape: bf16[32,256], index: 1, kind: input, shape index: {}]   ;;  %s1230_s2 = inlined_call_operand.vmem [shape: f32[1,256], index: 2, kind: input, shape index: {}]   ;;  %s1231_s3 = inlined_call_operand.vmem [shape: f32[1,256], index: 3, kind: input, shape index: {}]   ;;  %s1232_s4 = inlined_call_operand.<no memory space> [shape: f32[1,1], index: 4, kind: input, shape index: {}]   ;;  %s1233_s5 = inlined_call_operand.hbm [shape: f32[1,256], index: 5, kind: output, shape index: {}]  }
   0x1   :  { %v10_v0 = vstv %s1232_s4 }
   0x2   :  { %11 = vst [vmem:[#allocation2] sm:$0x1] %v10_v0 }
   0x3   :  { %12 = vsyncpa [#allocation4], 0 }
   0x4   :  { %14 = vsyncpa [#allocation4 + $0x1], 0  ;;  %s945_s20 = smov 0   ;;  %s947_s21 = smov 0  }
   0x5   :  { %s949_s22 = smov 0   ;;  %s951_s23 = smov 0  }
   0x6 LB: > { %s756_s4 = sadd.s32 4294967295, %s908_s23   ;;  %s757_s24 = sadd.s32 4294967294, %s908_s23   ;;  %s908_s23 = sphi %s951_s23, %s1239_s23   ;;  %s904_s22 = sphi %s949_s22, %s1238_s22   ;;  %s900_s21 = sphi %s947_s21, %s1237_s21   ;;  %s896_s20 = sphi %s945_s20, %s1236_s20  }
   0x7   : > { %s968_s25 = sadd.s32 1, %s908_s23   ;;  %s137_s26 = sadd.s32 1, %s904_s22 }
   0x8   : > { %s134_s27 = ssub.s32 %s908_s23, %s968_s25  ;;  %p147_p0 = scmp.ne.s32.totalorder %s904_s22, %s900_s21 }
   0x9   : > { %p135_p1 = scmp.eq.s32.totalorder %s134_s27, 0  ;;  %p148_p2 = scmp.eq.s32.totalorder %s756_s4, 1 }
   0xa   : > { %p153_p3 = scmp.ne.s32.totalorder %s900_s21, %s896_s20  ;;  %p154_p4 = scmp.eq.s32.totalorder %s757_s24, 1 }
   0xb   : > { %s978_s28 = scalar_select %p135_p1, %s904_s22, %s137_s26  }
   0xc   : > { %p980_p5 = por %p148_p2, %p147_p0  ;;  %p984_p6 = por %p154_p4, %p153_p3 }
   0xd   : > { %p760_p7 = scmp.ge.s32.totalorder %s908_s23, 1  ;;  %p193_p8 = scmp.lt.s32.totalorder %s908_s23, 3 }
   0xf   : > { %p194_p9 = pnand %p760_p7, %p193_p8 }
  0x10   : > { %v832_v1 = vld [vmem:[%s1229_s1 + $0x4] ss:$8 sps:$4 sm:$0xff] (!%p194_p9)   ;;  %s993_s8 = sshll.u32 (!%p194_p9), %s756_s4, 4  ;;  %v834_v2 = vld [vmem:[%s1229_s1] ss:$8 sps:$4 sm:$0xff] (!%p194_p9)   ;;  %v910_v3 = vmov (!%p194_p9), 0   ;;  %v249_v14 = vlaneseq (!%p194_p9) }
  0x11   : > { %197 = sbr.rel (%p194_p9) target bundleno = 543 (0x21f), region = 40  ;;  %376 = vmatprep.mubr.bf16.mxu0 (!%p194_p9), %v910_v3  ;;  %416 = vmatprep.mubr.bf16.mxu1 (!%p194_p9), %v910_v3  ;;  %p221_p10 = scmp.lt.s32.totalorder (!%p194_p9), %s993_s8, 31  ;;  %v835_v4 = vld [vmem:[%s1229_s1 + $0x14] ss:$8 sps:$4 sm:$0xff] (!%p194_p9)   ;;  %v837_v5 = vld [vmem:[%s1229_s1 + $0x10] ss:$8 sps:$4 sm:$0xff] (!%p194_p9)  }
  0x12   : > { %344 = vmatprep.subr.bf16.mxu0 (!%p194_p9), %v832_v1  ;;  %786 = vmatprep.subr.bf16.mxu1 (!%p194_p9), %v832_v1  ;;  %vm319_vm0 = vcmask (!%p194_p9), 261120   ;;  %v250_v15 = vshrl.u32 (!%p194_p9), %v249_v14, 7  ;;  %v247_v17 = vld [vmem:[%s1230_s2] sm:$0x3] (!%p194_p9)  ;;  %s218_s6 = sand.u32 (!%p194_p9), 1, %s900_s21   ;;  %s1186_s12 = scalar_lea.hbm (!%p194_p9), %s1233_s5, %s993_s8 }
  0x13   : > { %345 = vmatpush1.bf16.msra.mxu0 (!%p194_p9), %v834_v2  ;;  %788 = vmatpush1.bf16.msra.mxu1 (!%p194_p9), %v834_v2  ;;  %v553_v21 = vld [vmem:[%s1231_s3] sm:$0x3] (!%p194_p9)  ;;  %s219_s7 = scalar_lea.vmem (!%p194_p9), [#allocation3], %s218_s6  ;;  %s690_s13 = scalar_lea.sflag (!%p194_p9), [#allocation4], %s218_s6 }
  0x14   : > { %346 = vmatprep.subr.bf16.mxu0 (!%p194_p9), %v835_v4  ;;  %787 = vmatprep.subr.bf16.mxu1 (!%p194_p9), %v835_v4  ;;  %v1026_v16 = vsub.s32 (!%p194_p9), 0, %v250_v15  ;;  %v255_v18 = vsub.s32 (!%p194_p9), 1, %v250_v15  ;;  %s702_s9 = sshll.u32 (!%p194_p9), %s219_s7, 4  ;;  %s1188_s9 = int_to_ptr.vmem [resolvable:$true] %s702_s9 }
  0x15   : > { %830 = vset.pattern.permute.xlu1 (!%p194_p9), %v910_v3  ;;  %s846_s14 = scalar_lea.vmem (!%p194_p9), %s1188_s9, 16 }
  0x16   : > { %v1032_v19 = vrot.slane (!%p194_p9), %v247_v17, %v1026_v16  ;;  %v1034_v20 = vrot.slane (!%p194_p9), %v247_v17, %v255_v18  ;;  %v1044_v32 = vrot.slane (!%p194_p9), %v553_v21, %v1026_v16  ;;  %v1047_v41 = vrot.slane (!%p194_p9), %v553_v21, %v255_v18  ;;  %p847_p11 = scmp.ne.s32.totalorder (!%p194_p9), %s1188_s9, %s846_s14 }
  0x17   : > { %347 = vmatpush1.bf16.msra.mxu0 (!%p194_p9), %v837_v5  ;;  %789 = vmatpush1.bf16.msra.mxu1 (!%p194_p9), %v837_v5 }
  0x18   : > { %s222_s15 = scalar_select %p221_p10, %s993_s8, 31 }
  0x19   : > { %p848_p12 = pnand %p847_p11, %p980_p5 }
  0x1a   : > { %s762_s16 = sshll.u32 %s222_s15, 2  ;;  %s911_s15 = smov [#allocation3]  }
  0x1b   : > { %s224_s19 = scalar_lea.vmem %s1228_s0, %s762_s16  ;;  %p849_p13 = pneg %p848_p12 }
  0x1c   : > { %v838_v6 = vld [vmem:[%s224_s19] sm:$0xff]   ;;  %v840_v8 = vld [vmem:[%s224_s19 + $0x8] sm:$0xff]   ;;  %v841_v10 = vld [vmem:[%s224_s19 + $0x10] sm:$0xff]   ;;  %s850_s16 = sshll.u32 %s911_s15, 4  ;;  %s851_s16 = int_to_ptr.vmem [resolvable:$false] %s850_s16 }
  0x1d   : > { %v839_v7 = vld [vmem:[%s224_s19 + $0x20] sm:$0xff]   ;;  %775 = vmatmul.mubr.msk.bf16.vlgmr.msra.gmra.mrb[0].mxu0 %vm319_vm0, %v838_v6  ;;  %v843_v9 = vld [vmem:[%s224_s19 + $0x28] sm:$0xff]   ;;  %v844_v11 = vld [vmem:[%s224_s19 + $0x30] sm:$0xff]   ;;  %s852_s17 = scalar_lea.vmem %s851_s16, 32  ;;  %p853_p0 = scmp.lt.s32.totalorder %s1188_s9, %s851_s16 }
  0x1e   : > { %779 = vmatmul.mubr.msk.bf16.vlgmr.msra.gmra.mrb[0].mxu1 %vm319_vm0, %v839_v7  ;;  %386 = vmatprep.mubr.bf16.mxu0 %v910_v3  ;;  %v842_v12 = vld [vmem:[%s224_s19 + $0x18] sm:$0xff]   ;;  %p854_p1 = scmp.lt.s32.totalorder %s852_s17, %s846_s14 }
  0x1f   : > { %426 = vmatprep.mubr.bf16.mxu1 %v910_v3  ;;  %v845_v13 = vld [vmem:[%s224_s19 + $0x38] sm:$0xff]  }
  0x20   : > { %p855_p2 = por %p854_p1, %p853_p0 }
  0x22   : > { %p856_p3 = pnand %p855_p2, %p849_p13 }
  0x25   : > { %776 = vmatmul.mubr.msk.bf16.gmra.mrb[4].mxu0 %vm319_vm0, %v840_v8 }
  0x26   : > { %780 = vmatmul.mubr.msk.bf16.gmra.mrb[4].mxu1 %vm319_vm0, %v843_v9  ;;  %396 = vmatprep.mubr.bf16.mxu0 %v910_v3 }
  0x27   : > { %436 = vmatprep.mubr.bf16.mxu1 %v910_v3 }
  0x2d   : > { %777 = vmatmul.mubr.msk.bf16.gmra.mrb[8].mxu0 %vm319_vm0, %v841_v10 }
  0x2e   : > { %781 = vmatmul.mubr.msk.bf16.gmra.mrb[8].mxu1 %vm319_vm0, %v844_v11  ;;  %406 = vmatprep.mubr.bf16.mxu0 %v910_v3 }
  0x2f   : > { %446 = vmatprep.mubr.bf16.mxu1 %v910_v3 }
  0x35   : > { %778 = vmatmul.mubr.msk.bf16.gmra.mrb[12].mxu0 %vm319_vm0, %v842_v12 }
  0x36   : > { %782 = vmatmul.mubr.msk.bf16.gmra.mrb[12].mxu1 %vm319_vm0, %v845_v13 }
  0xf0   : > { %v378_v22 = vpop.f32.mrb[0].mxu0 }
  0xf1   : > { %v418_v23 = vpop.f32.mrb[0].mxu1  ;;  %v379_v24 = vadd.f32 %v378_v22, %v1032_v19  ;;  %v380_v26 = vpop.f32.mrb[1].mxu0 }
  0xf2   : > { %v419_v25 = vadd.f32 %v418_v23, %v1032_v19  ;;  %v420_v27 = vpop.f32.mrb[1].mxu1  ;;  %v381_v28 = vadd.f32 %v380_v26, %v1034_v20  ;;  %v382_v30 = vpop.f32.mrb[2].mxu0 }
  0xf3   : > { %v421_v29 = vadd.f32 %v420_v27, %v1034_v20  ;;  %v422_v31 = vpop.f32.mrb[2].mxu1  ;;  %vm457_vm1 = vcmp.ge.f32.partialorder %v379_v24, 0.0  ;;  %v489_v33 = vmul.f32 0.1, %v379_v24  ;;  %v383_v37 = vadd.f32 %v382_v30, %v1032_v19  ;;  %v384_v38 = vpop.f32.mrb[3].mxu0 }
  0xf4   : > { %vm473_vm2 = vcmp.ge.f32.partialorder %v419_v25, 0.0  ;;  %v505_v34 = vmul.f32 0.1, %v419_v25  ;;  %vm458_vm3 = vcmp.ge.f32.partialorder %v381_v28, 0.0  ;;  %v490_v35 = vmul.f32 0.1, %v381_v28 }
  0xf5   : > { %v506_v36 = vmul.f32 0.1, %v421_v29  ;;  %v424_v39 = vpop.f32.mrb[3].mxu1  ;;  %v521_v40 = vsel %vm457_vm1, %v379_v24, %v489_v33  ;;  %vm474_vm4 = vcmp.ge.f32.partialorder %v421_v29, 0.0  ;;  %v385_v42 = vadd.f32 %v384_v38, %v1034_v20 }
  0xf6   : > { %v522_v43 = vsel %vm458_vm3, %v381_v28, %v490_v35  ;;  %v537_v44 = vsel %vm473_vm2, %v419_v25, %v505_v34  ;;  %vm459_vm5 = vcmp.ge.f32.partialorder %v383_v37, 0.0  ;;  %v491_v45 = vmul.f32 0.1, %v383_v37 }
  0xf7   : > { %v1051_v46 = vadd.f32 %v422_v31, %v1032_v19  ;;  %v565_v47 = vmul.f32 %v1044_v32, %v521_v40  ;;  %vm460_vm6 = vcmp.ge.f32.partialorder %v385_v42, 0.0  ;;  %v492_v48 = vmul.f32 0.1, %v385_v42 }
  0xf8   : > { %v1055_v49 = vadd.f32 %v424_v39, %v1034_v20  ;;  %v388_v50 = vpop.f32.mrb[4].mxu0  ;;  %v566_v51 = vmul.f32 %v1047_v41, %v522_v43  ;;  %v538_v52 = vsel %vm474_vm4, %v421_v29, %v506_v36  ;;  %v581_v53 = vmul.f32 %v1044_v32, %v537_v44 }
  0xf9   : > { %v523_v54 = vsel %vm459_vm5, %v383_v37, %v491_v45  ;;  %v428_v55 = vpop.f32.mrb[4].mxu1  ;;  %v389_v56 = vadd.f32 %v388_v50, %v1032_v19  ;;  %v390_v57 = vpop.f32.mrb[5].mxu0  ;;  %v582_v58 = vmul.f32 %v1047_v41, %v538_v52  ;;  %v524_v59 = vsel %vm460_vm6, %v385_v42, %v492_v48 }
  0xfa   : > { %v567_v60 = vmul.f32 %v1044_v32, %v523_v54  ;;  %v430_v61 = vpop.f32.mrb[5].mxu1  ;;  %v1063_v62 = vmul.f32 0.1, %v1051_v46  ;;  %v391_v63 = vadd.f32 %v390_v57, %v1034_v20  ;;  %v392_v0 = vpop.f32.mrb[6].mxu0  ;;  %v597_v1 = vadd.f32 %v566_v51, %v565_v47 }
  0xfb   : > { %v568_v2 = vmul.f32 %v1047_v41, %v524_v59  ;;  %v432_v4 = vpop.f32.mrb[6].mxu1  ;;  %vm475_vm7 = vcmp.ge.f32.partialorder %v1051_v46, 0.0  ;;  %vm461_vm8 = vcmp.ge.f32.partialorder %v389_v56, 0.0  ;;  %v493_v5 = vmul.f32 0.1, %v389_v56  ;;  %v394_v7 = vpop.f32.mrb[7].mxu0 }
  0xfc   : > { %v393_v6 = vadd.f32 %v392_v0, %v1032_v19  ;;  %v621_v8 = vadd.f32 %v582_v58, %v581_v53  ;;  %v1069_v9 = vpop.f32.mrb[7].mxu1  ;;  %vm462_vm9 = vcmp.ge.f32.partialorder %v391_v63, 0.0  ;;  %v494_v10 = vmul.f32 0.1, %v391_v63  ;;  %598 = vadd.xlane.f32.xlu0 %v597_v1 }
  0xfd   : > { %v395_v11 = vadd.f32 %v394_v7, %v1034_v20  ;;  %v600_v12 = vadd.f32 %v568_v2, %v567_v60  ;;  %v525_v14 = vsel %vm461_vm8, %v389_v56, %v493_v5  ;;  %v1073_v15 = vadd.f32 %v428_v55, %v1032_v19 }
  0xfe   : > { %vm463_vm10 = vcmp.ge.f32.partialorder %v393_v6, 0.0  ;;  %v495_v13 = vmul.f32 0.1, %v393_v6  ;;  %v526_v18 = vsel %vm462_vm9, %v391_v63, %v494_v10  ;;  %v569_v21 = vmul.f32 %v1044_v32, %v525_v14 }
  0xff   : > { %vm464_vm11 = vcmp.ge.f32.partialorder %v395_v11, 0.0  ;;  %v496_v17 = vmul.f32 0.1, %v395_v11  ;;  %vm476_vm12 = vcmp.ge.f32.partialorder %v1055_v49, 0.0  ;;  %v508_v22 = vmul.f32 0.1, %v1055_v49 }
 0x100   : > { %v398_v23 = vpop.f32.mrb[8].mxu0  ;;  %v570_v24 = vmul.f32 %v1047_v41, %v526_v18  ;;  %v527_v25 = vsel %vm463_vm10, %v393_v6, %v495_v13  ;;  %622 = vadd.xlane.f32.xlu0 %v621_v8  ;;  %v1082_v31 = vadd.f32 %v430_v61, %v1034_v20  ;;  %v1087_v38 = vmul.f32 0.1, %v1073_v15 }
 0x101   : > { %v438_v26 = vpop.f32.mrb[8].mxu1  ;;  %v399_v27 = vadd.f32 %v398_v23, %v1032_v19  ;;  %v400_v28 = vpop.f32.mrb[9].mxu0  ;;  %v528_v29 = vsel %vm464_vm11, %v395_v11, %v496_v17  ;;  %v571_v30 = vmul.f32 %v1044_v32, %v527_v25  ;;  %v1093_v44 = vadd.f32 %v432_v4, %v1032_v19 }
 0x102   : > { %v440_v33 = vpop.f32.mrb[9].mxu1  ;;  %v401_v34 = vadd.f32 %v400_v28, %v1034_v20  ;;  %v402_v35 = vpop.f32.mrb[10].mxu0  ;;  %v603_v36 = vadd.f32 %v570_v24, %v569_v21  ;;  %v572_v37 = vmul.f32 %v1047_v41, %v528_v29  ;;  %v1099_v53 = vmul.f32 0.1, %v1082_v31 }
 0x103   : > { %v1089_v39 = vpop.f32.mrb[10].mxu1  ;;  %vm465_vm13 = vcmp.ge.f32.partialorder %v399_v27, 0.0  ;;  %v497_v40 = vmul.f32 0.1, %v399_v27  ;;  %v403_v42 = vadd.f32 %v402_v35, %v1032_v19  ;;  %v404_v43 = vpop.f32.mrb[11].mxu0  ;;  %vm477_vm1 = vcmp.ge.f32.partialorder %v1073_v15, 0.0 }
 0x104   : > { %vm466_vm14 = vcmp.ge.f32.partialorder %v401_v34, 0.0  ;;  %v498_v45 = vmul.f32 0.1, %v401_v34  ;;  %v405_v47 = vadd.f32 %v404_v43, %v1034_v20  ;;  %604 = vadd.xlane.f32.xlu1 %v603_v36  ;;  %v606_v48 = vadd.f32 %v572_v37, %v571_v30  ;;  %v1096_v50 = vpop.f32.mrb[11].mxu1  ;;  %601 = vadd.xlane.f32.xlu0 %v600_v12 }
 0x105   : > { %vm467_vm15 = vcmp.ge.f32.partialorder %v403_v42, 0.0  ;;  %v499_v51 = vmul.f32 0.1, %v403_v42  ;;  %v529_v52 = vsel %vm465_vm13, %v399_v27, %v497_v40  ;;  %vm479_vm2 = vcmp.ge.f32.partialorder %v1093_v44, 0.0 }
 0x106   : > { %vm468_vm0 = vcmp.ge.f32.partialorder %v405_v47, 0.0  ;;  %v500_v54 = vmul.f32 0.1, %v405_v47  ;;  %v530_v55 = vsel %vm466_vm14, %v401_v34, %v498_v45  ;;  %v573_v56 = vmul.f32 %v1044_v32, %v529_v52 }
 0x107   : > { %v574_v57 = vmul.f32 %v1047_v41, %v530_v55  ;;  %v531_v58 = vsel %vm467_vm15, %v403_v42, %v499_v51  ;;  %v511_v59 = vmul.f32 0.1, %v1093_v44  ;;  %v539_v60 = vsel %vm475_vm7, %v1051_v46, %v1063_v62 }
 0x108   : > { %607 = vadd.xlane.f32.xlu1 %v606_v48  ;;  %v408_v61 = vpop.f32.mrb[12].mxu0  ;;  %v532_v63 = vsel %vm468_vm0, %v405_v47, %v500_v54  ;;  %v575_v0 = vmul.f32 %v1044_v32, %v531_v58  ;;  %v540_v1 = vsel %vm476_vm12, %v1055_v49, %v508_v22  ;;  %v583_v2 = vmul.f32 %v1044_v32, %v539_v60 }
 0x109   : > { %v448_v4 = vpop.f32.mrb[12].mxu1  ;;  %v409_v5 = vadd.f32 %v408_v61, %v1032_v19  ;;  %v410_v6 = vpop.f32.mrb[13].mxu0  ;;  %v609_v7 = vadd.f32 %v574_v57, %v573_v56  ;;  %v576_v8 = vmul.f32 %v1047_v41, %v532_v63  ;;  %vm478_vm3 = vcmp.ge.f32.partialorder %v1082_v31, 0.0 }
 0x10a   : > { %v584_v46 = vmul.f32 %v1047_v41, %v540_v1  ;;  %v450_v62 = vpop.f32.mrb[13].mxu1  ;;  %v411_v10 = vadd.f32 %v410_v6, %v1034_v20  ;;  %v412_v11 = vpop.f32.mrb[14].mxu0  ;;  %v435_v49 = vadd.f32 %v1069_v9, %v1034_v20  ;;  %v1123_v12 = vadd.f32 %v438_v26, %v1032_v19 }
 0x10b   : > { %v1126_v13 = vadd.f32 %v440_v33, %v1034_v20  ;;  %v452_v14 = vpop.f32.mrb[14].mxu1  ;;  %vm469_vm4 = vcmp.ge.f32.partialorder %v409_v5, 0.0  ;;  %v501_v17 = vmul.f32 0.1, %v409_v5  ;;  %v413_v18 = vadd.f32 %v412_v11, %v1032_v19  ;;  %v414_v21 = vpop.f32.mrb[15].mxu0  ;;  %610 = vadd.xlane.f32.xlu0 %v609_v7 }
 0x10c   : > { %v612_v22 = vadd.f32 %v576_v8, %v575_v0  ;;  %v454_v23 = vpop.f32.mrb[15].mxu1  ;;  %vm470_vm5 = vcmp.ge.f32.partialorder %v411_v10, 0.0  ;;  %v502_v24 = vmul.f32 0.1, %v411_v10  ;;  %v415_v25 = vadd.f32 %v414_v21, %v1034_v20 }
 0x10d   : > { %v624_v9 = vadd.f32 %v584_v46, %v583_v2  ;;  %vm471_vm6 = vcmp.ge.f32.partialorder %v413_v18, 0.0  ;;  %v503_v26 = vmul.f32 0.1, %v413_v18  ;;  %v533_v27 = vsel %vm469_vm4, %v409_v5, %v501_v17 }
 0x10e   : > { %613 = vadd.xlane.f32.xlu1 %v612_v22  ;;  %vm480_vm7 = vcmp.ge.f32.partialorder %v435_v49, 0.0  ;;  %vm472_vm8 = vcmp.ge.f32.partialorder %v415_v25, 0.0  ;;  %v504_v28 = vmul.f32 0.1, %v415_v25  ;;  %v534_v29 = vsel %vm470_vm5, %v411_v10, %v502_v24  ;;  %v677_v24 = vld [vmem:[#allocation2] sm:$0x1] }
 0x10f   : > { %v577_v30 = vmul.f32 %v1044_v32, %v533_v27  ;;  %v578_v33 = vmul.f32 %v1047_v41, %v534_v29  ;;  %v535_v34 = vsel %vm471_vm6, %v413_v18, %v503_v26  ;;  %v512_v35 = vmul.f32 0.1, %v435_v49 }
 0x110   : > { %vm481_vm9 = vcmp.ge.f32.partialorder %v1123_v12, 0.0  ;;  %v536_v36 = vsel %vm472_vm8, %v415_v25, %v504_v28  ;;  %v579_v37 = vmul.f32 %v1044_v32, %v535_v34  ;;  %v513_v40 = vmul.f32 0.1, %v1123_v12 }
 0x111   : > { %vm482_vm10 = vcmp.ge.f32.partialorder %v1126_v13, 0.0  ;;  %v615_v42 = vadd.f32 %v578_v33, %v577_v30  ;;  %v580_v43 = vmul.f32 %v1047_v41, %v536_v36  ;;  %v514_v45 = vmul.f32 0.1, %v1126_v13 }
 0x112   : > { %v443_v47 = vadd.f32 %v1089_v39, %v1032_v19  ;;  %v445_v48 = vadd.f32 %v1096_v50, %v1034_v20  ;;  %v543_v51 = vsel %vm479_vm2, %v1093_v44, %v511_v59  ;;  %v544_v52 = vsel %vm480_vm7, %v435_v49, %v512_v35 }
 0x113   : > { %v541_v54 = vsel %vm477_vm1, %v1073_v15, %v1087_v38  ;;  %616 = vadd.xlane.f32.xlu0 %v615_v42  ;;  %v618_v55 = vadd.f32 %v580_v43, %v579_v37  ;;  %v587_v39 = vmul.f32 %v1044_v32, %v543_v51  ;;  %v588_v50 = vmul.f32 %v1047_v41, %v544_v52 }
 0x114   : > { %vm483_vm11 = vcmp.ge.f32.partialorder %v443_v47, 0.0  ;;  %v515_v56 = vmul.f32 0.1, %v443_v47  ;;  %vm484_vm12 = vcmp.ge.f32.partialorder %v445_v48, 0.0  ;;  %v516_v57 = vmul.f32 0.1, %v445_v48 }
 0x115   : > { %v542_v44 = vsel %vm478_vm3, %v1082_v31, %v1099_v53  ;;  %619 = vadd.xlane.f32.xlu1 %v618_v55  ;;  %v585_v58 = vmul.f32 %v1044_v32, %v541_v54  ;;  %v449_v38 = vadd.f32 %v448_v4, %v1032_v19  ;;  %v451_v59 = vadd.f32 %v450_v62, %v1034_v20 }
 0x116   : > { %v586_v15 = vmul.f32 %v1047_v41, %v542_v44  ;;  %v630_v60 = vadd.f32 %v588_v50, %v587_v39  ;;  %v453_v61 = vadd.f32 %v452_v14, %v1032_v19  ;;  %v455_v63 = vadd.f32 %v454_v23, %v1034_v20 }
 0x117   : > { %v547_v0 = vsel %vm483_vm11, %v443_v47, %v515_v56  ;;  %vm485_vm13 = vcmp.ge.f32.partialorder %v449_v38, 0.0  ;;  %v517_v2 = vmul.f32 0.1, %v449_v38  ;;  %vm486_vm14 = vcmp.ge.f32.partialorder %v451_v59, 0.0 }
 0x118   : > { %v627_v1 = vadd.f32 %v586_v15, %v585_v58  ;;  %v518_v31 = vmul.f32 0.1, %v451_v59  ;;  %vm487_vm15 = vcmp.ge.f32.partialorder %v453_v61, 0.0  ;;  %v519_v53 = vmul.f32 0.1, %v453_v61 }
 0x119   : > { %vm488_vm0 = vcmp.ge.f32.partialorder %v455_v63, 0.0  ;;  %625 = vadd.xlane.f32.xlu1 %v624_v9  ;;  %v520_v5 = vmul.f32 0.1, %v455_v63  ;;  %v548_v4 = vsel %vm484_vm12, %v445_v48, %v516_v57  ;;  %v591_v6 = vmul.f32 %v1044_v32, %v547_v0 }
 0x11a   : > { %628 = vadd.xlane.f32.xlu0 %v627_v1  ;;  %v545_v19 = vsel %vm481_vm9, %v1123_v12, %v513_v40  ;;  %v592_v20 = vmul.f32 %v1047_v41, %v548_v4  ;;  %v546_v7 = vsel %vm482_vm10, %v1126_v13, %v514_v45  ;;  %v551_v46 = vsel %vm487_vm15, %v453_v61, %v519_v53 }
 0x11b   : > { %v589_v8 = vmul.f32 %v1044_v32, %v545_v19  ;;  %v590_v62 = vmul.f32 %v1047_v41, %v546_v7  ;;  %v552_v10 = vsel %vm488_vm0, %v455_v63, %v520_v5  ;;  %v595_v11 = vmul.f32 %v1044_v32, %v551_v46 }
 0x11c   : > { %v549_v49 = vsel %vm485_vm13, %v449_v38, %v517_v2  ;;  %v636_v14 = vadd.f32 %v592_v20, %v591_v6  ;;  %v596_v17 = vmul.f32 %v1047_v41, %v552_v10  ;;  %v550_v12 = vsel %vm486_vm14, %v451_v59, %v518_v31 }
 0x11d   : > { %v593_v18 = vmul.f32 %v1044_v32, %v549_v49  ;;  %631 = vadd.xlane.f32.xlu1 %v630_v60  ;;  %v633_v21 = vadd.f32 %v590_v62, %v589_v8  ;;  %v594_v13 = vmul.f32 %v1047_v41, %v550_v12 }
 0x11e   : > { %v642_v22 = vadd.f32 %v596_v17, %v595_v11 }
 0x11f   : > { %634 = vadd.xlane.f32.xlu0 %v633_v21  ;;  %v639_v23 = vadd.f32 %v594_v13, %v593_v18 }
 0x121   : > { %637 = vadd.xlane.f32.xlu1 %v636_v14 }
 0x123   : > { %640 = vadd.xlane.f32.xlu0 %v639_v23 }
 0x125   : > { %643 = vadd.xlane.f32.xlu1 %v642_v22 }
 0x136   : > { %680 = vperm.xlu1 %830, %v677_v24  }
 0x189   : > { %v599_v25 = vpop.xlane.xlu0 %598 }
 0x18a   : > { %645 = vxpose.xlu0.b32.start [1/16] (narrow) %v599_v25, 8 }
 0x18d   : > { %v623_v9 = vpop.xlane.xlu0 %622 }
 0x191   : > { %v602_v26 = vpop.xlane.xlu0 %601  ;;  %v605_v27 = vpop.xlane.xlu1 %604 }
 0x192   : > { %646 = vxpose.xlu0.b32.cont [2/16] (narrow) %v602_v26, 8 }
 0x195   : > { %v608_v32 = vpop.xlane.xlu1 %607 }
 0x196   : > { %647 = vxpose.xlu0.b32.cont [3/16] (narrow) %v605_v27, 8 }
 0x198   : > { %v611_v28 = vpop.xlane.xlu0 %610 }
 0x19a   : > { %648 = vxpose.xlu0.b32.cont [4/16] (narrow) %v608_v32, 8 }
 0x19b   : > { %v614_v41 = vpop.xlane.xlu1 %613 }
 0x19e   : > { %649 = vxpose.xlu0.b32.cont [5/16] (narrow) %v611_v28, 8 }
 0x1a0   : > { %v617_v29 = vpop.xlane.xlu0 %616 }
 0x1a2   : > { %650 = vxpose.xlu0.b32.cont [6/16] (narrow) %v614_v41, 8  ;;  %v620_v30 = vpop.xlane.xlu1 %619 }
 0x1a6   : > { %651 = vxpose.xlu0.b32.cont [7/16] (narrow) %v617_v29, 8  ;;  %v626_v33 = vpop.xlane.xlu1 %625 }
 0x1a7   : > { %v629_v34 = vpop.xlane.xlu0 %628 }
 0x1aa   : > { %652 = vxpose.xlu0.b32.cont [8/16] (narrow) %v620_v30, 8  ;;  %v632_v35 = vpop.xlane.xlu1 %631 }
 0x1ac   : > { %v635_v36 = vpop.xlane.xlu0 %634 }
 0x1ae   : > { %653 = vxpose.xlu0.b32.cont [9/16] (narrow) %v623_v9, 8  ;;  %v638_v37 = vpop.xlane.xlu1 %637 }
 0x1b0   : > { %v641_v40 = vpop.xlane.xlu0 %640 }
 0x1b2   : > { %654 = vxpose.xlu0.b32.cont [10/16] (narrow) %v626_v33, 8  ;;  %v644_v42 = vpop.xlane.xlu1 %643 }
 0x1b6   : > { %655 = vxpose.xlu0.b32.cont [11/16] (narrow) %v629_v34, 8  ;;  %v681_v43 = vpop.permute.xlu1 %680 }
 0x1b7   : > { %v686_v45 = vrot.slane %v681_v43, %v1026_v16 }
 0x1ba   : > { %656 = vxpose.xlu0.b32.cont [12/16] (narrow) %v632_v35, 8 }
 0x1be   : > { %657 = vxpose.xlu0.b32.cont [13/16] (narrow) %v635_v36, 8 }
 0x1c2   : > { %658 = vxpose.xlu0.b32.cont [14/16] (narrow) %v638_v37, 8 }
 0x1c6   : > { %659 = vxpose.xlu0.b32.cont [15/16] (narrow) %v641_v40, 8 }
 0x1ca   : > { %660 = vxpose.xlu0.b32.end [16/16] (narrow) %v644_v42, 8 }
 0x1f3   : > { %831 = vset.pattern.permute.xlu0 %v910_v3 }
 0x20e   : > { %v661_v47 = vpop.trf.xlu0 }
 0x20f   : > { %v687_v48 = vadd.f32 %v686_v45, %v661_v47 }
 0x211   : > { %688 = vst [vmem:[%s219_s7] sm:$0x1] %v687_v48 }
 0x212   : > { %859 = shalt.err (!%p856_p3)
}
 0x213   : > { %s860_s8 = scalar_lea.hbm %s1186_s12, 16  ;;  %s864_s4 = scalar_lea.hbm %s1233_s5, 32 }
 0x214   : > { %p861_p4 = scmp.ne.s32.totalorder %s1186_s12, %s860_s8  ;;  %p865_p9 = scmp.lt.u32.totalorder %s1186_s12, %s1233_s5 }
 0x215   : > { %p866_p10 = scmp.lt.u32.totalorder %s864_s4, %s860_s8  ;;  %p868_p12 = scmp.lt.u32.totalorder %s860_s8, %s1186_s12 }
 0x216   : > { %p862_p7 = pnand %p861_p4, %p980_p5 }
 0x217   : > { %p867_p11 = por %p866_p10, %p865_p9 }
 0x218   : > { %p863_p8 = pneg %p862_p7 }
 0x219   : > { %p869_p13 = por %p868_p12, %p867_p11 }
 0x21b   : > { %p870_p0 = pnand %p869_p13, %p863_p8 }
 0x21d   : > { %873 = shalt.err (!%p870_p0)
}
 0x21e   : > { %790 = dma.vmem_to_hbm [thread:$0]  (%p980_p5), %s1188_s9, 16, %s1186_s12, %s690_s13  }
 0x21f PF: > { %p796_p1 = scmp.ge.s32.totalorder %s908_s23, 2  ;;  %s714_s27 = sand.u32 1, %s896_s20  }
 0x220   : > { %s715_s6 = scalar_lea.sflag [#allocation4], %s714_s27 }
 0x221   : > { %p793_p2 = pnand %p796_p1, %p984_p6 }
 0x223   : > { %891 = dma.done.wait (!%p793_p2), %s715_s6, 16  }
 0x224   : > { %893 = vsyncadd (!%p793_p2), %s715_s6, 4294967280  ;;  %p17_p3 = scmp.ge.s32.totalorder %s968_s25, 4   ;;  %s1236_s20 = smov %s900_s21 }
 0x225   : > { %s1237_s21 = smov %s904_s22  ;;  %s1238_s22 = smov %s978_s28 }
 0x226   : > { %s1239_s23 = smov %s968_s25  ;;  %19 = sbr.rel (!%p17_p3) target bundleno = 6 (0x6), region = 75 }
 0x22d   :  { %719 = vsyncpa [#allocation4], 1 }
 0x22e   :  { %721 = vsyncpa [#allocation4 + $0x1], 1 }

</bundles_post_ra>
